<compile_context>
chip_gen: v7x
topology: tpu7x:2x2x1
jax: 0.10.0
libtpu: 0.0.40
codegen_flags: <defaults>
</compile_context>

<pallas_src>
import jax
import jax.numpy as jnp
from jax.experimental import pallas as pl
from jax.experimental.pallas import tpu as pltpu


def _round_up(v, m):
    return ((v + m - 1) // m) * m


def _discriminator_kernel(x_ref, w1_ref, b1_ref, w2_ref, b2_ref,
                          last_ref, logits_ref, probs_ref):
    # Hidden layer: Linear -> LeakyReLU(0.2). Dropout = identity in eval mode.
    # bf16 operands on the MXU, f32 accumulation; everything after stays f32.
    h = jnp.dot(x_ref[...], w1_ref[...],
                preferred_element_type=jnp.float32) + b1_ref[...]
    h = jnp.where(h >= 0, h, 0.2 * h)                 # LeakyReLU(negative_slope=0.2)
    last_ref[...] = h.astype(last_ref.dtype)          # f32 last_rep writeback

    # Logit layer (lane-padded output width; padded bias lanes are -1e30).
    logits = jnp.dot(h.astype(w2_ref.dtype), w2_ref[...],
                     preferred_element_type=jnp.float32) + b2_ref[...]
    logits_ref[...] = logits.astype(logits_ref.dtype)

    # Softmax(dim=-1), numerically stable; padded lanes contribute exp(-huge)=0.
    m = jnp.max(logits, axis=-1, keepdims=True)
    e = jnp.exp(logits - m)
    denom = jnp.sum(e, axis=-1, keepdims=True)
    inv = pl.reciprocal(denom, approx=True)           # EUP slot; frees VALU
    probs_ref[...] = (e * inv).astype(probs_ref.dtype)


def prepare_discriminator_params(w1, b1, w2, b2):
    """One-time parameter prep (do NOT call per forward):
    - cast matmul weights to bf16 (MXU inputs),
    - lane-pad the logit layer columns to a multiple of 128, padded bias
      columns get -1e30 so softmax ignores them.
    Returns (w1_bf16, b1_f32, w2p_bf16, b2p_f32, n_out)."""
    n_out = w2.shape[1]
    n_pad = max(128, _round_up(n_out, 128))
    if n_pad != n_out:
        w2 = jnp.pad(w2, ((0, 0), (0, n_pad - n_out)))
        b2 = jnp.pad(b2, ((0, 0), (0, n_pad - n_out)), constant_values=-1e30)
    return (w1.astype(jnp.bfloat16), b1.astype(jnp.float32),
            w2.astype(jnp.bfloat16), b2.astype(jnp.float32), n_out)


def discriminator_forward(x, w1_bf16, b1, w2p_bf16, b2p, n_out):
    """x: [B, input_size] f32; w1_bf16: [input_size, hidden] bf16; b1: [1, hidden] f32;
    w2p_bf16: [hidden, n_pad] bf16; b2p: [1, n_pad] f32.
    Returns (last_rep [B, hidden] f32, logits [B, n_out] f32, probs [B, n_out] f32)."""
    B, in_dim = x.shape
    hidden = w1_bf16.shape[1]
    n_pad = w2p_bf16.shape[1]

    # Batch tile: multiple of 16 (bf16 sublane packing), at least 2 grid steps
    # when the batch allows it (so v7x's two TensorCores both get work), capped
    # at 512 rows (mem-bound tiles hit ~85% of HBM roofline at 512).
    if B <= 16:
        tm = _round_up(B, 8)
    else:
        tm = min(512, _round_up(pl.cdiv(B, 2), 16))
    grid = (pl.cdiv(B, tm),)

    # Halve the x HBM stream; accumulation stays f32 inside the kernel.
    xb = x.astype(jnp.bfloat16)

    # Explicit scoped-VMEM budget (v5e default is only 16 MiB): single-buffered
    # bf16 weights + double-buffered x tile + double-buffered f32 outputs.
    w_bytes = in_dim * hidden * 2 + hidden * 4 + hidden * n_pad * 2 + n_pad * 4
    x_bytes = 2 * tm * in_dim * 2
    o_bytes = 2 * (tm * hidden * 4 + 2 * tm * n_pad * 4)
    vmem_limit = int(min(max(2 * (w_bytes + x_bytes + o_bytes), 32 << 20), 64 << 20))

    cost = pl.CostEstimate(
        flops=2 * B * (in_dim * hidden + hidden * n_pad),
        transcendentals=B * n_pad + B,                      # exp + approx reciprocal
        bytes_accessed=(2 * B * in_dim                       # x (bf16)
                        + 2 * (in_dim * hidden + hidden * n_pad)  # weights (bf16)
                        + 4 * (hidden + n_pad)                    # biases (f32)
                        + 4 * (B * hidden + 2 * B * n_pad)),      # outputs (f32)
    )

    out_shape = (
        jax.ShapeDtypeStruct((B, hidden), jnp.float32),     # last_rep
        jax.ShapeDtypeStruct((B, n_pad), jnp.float32),      # logits (padded)
        jax.ShapeDtypeStruct((B, n_pad), jnp.float32),      # probs (padded)
    )
    vmem = pltpu.MemorySpace.VMEM

    def _build(single_buffer_weights):
        resident = {"memory_space": vmem}
        if single_buffer_weights:
            # Grid-invariant operands: no re-DMA across steps, so a single
            # buffer is enough; reclaims VMEM on v7x (64 MiB physical).
            resident["pipeline_mode"] = pl.Buffered(1)
        in_specs = [
            pl.BlockSpec((tm, in_dim), lambda i: (i, 0), memory_space=vmem),   # x tile
            pl.BlockSpec((in_dim, hidden), lambda i: (0, 0), **resident),      # w1 resident
            pl.BlockSpec((1, hidden), lambda i: (0, 0), **resident),           # b1 resident
            pl.BlockSpec((hidden, n_pad), lambda i: (0, 0), **resident),       # w2 resident
            pl.BlockSpec((1, n_pad), lambda i: (0, 0), **resident),            # b2 resident
        ]
        out_specs = (
            pl.BlockSpec((tm, hidden), lambda i: (i, 0), memory_space=vmem),   # last_rep
            pl.BlockSpec((tm, n_pad), lambda i: (i, 0), memory_space=vmem),    # logits
            pl.BlockSpec((tm, n_pad), lambda i: (i, 0), memory_space=vmem),    # probs
        )
        return pl.pallas_call(
            _discriminator_kernel,
            out_shape=out_shape,
            grid=grid,
            in_specs=in_specs,
            out_specs=out_specs,
            compiler_params=pltpu.CompilerParams(
                dimension_semantics=("parallel",),
                vmem_limit_bytes=vmem_limit),
            cost_estimate=cost,
        )

    try:
        last_rep, logits_p, probs_p = _build(True)(xb, w1_bf16, b1, w2p_bf16, b2p)
    except Exception:
        # Graceful degradation if single-buffer pipeline_mode is unsupported by
        # the installed JAX: fall back to default 2-deep buffering.
        last_rep, logits_p, probs_p = _build(False)(xb, w1_bf16, b1, w2p_bf16, b2p)

    # Drop the padded lanes outside the kernel (never hand out padded buffers).
    return last_rep, logits_p[:, :n_out], probs_p[:, :n_out]


def init_discriminator_params(key, input_size, hidden_size, num_labels):
    """Deterministic synthetic parameters (shapes match the PyTorch module,
    Linear weights stored pre-transposed as (in, out))."""
    k1, k2, k3, k4 = jax.random.split(key, 4)
    w1 = jax.random.normal(k1, (input_size, hidden_size), jnp.float32) * 0.05
    b1 = jax.random.normal(k2, (1, hidden_size), jnp.float32) * 0.05
    w2 = jax.random.normal(k3, (hidden_size, num_labels + 1), jnp.float32) * 0.05
    b2 = jax.random.normal(k4, (1, num_labels + 1), jnp.float32) * 0.05
    return w1, b1, w2, b2


if __name__ == "__main__":
    # Small shapes consistent with the module: batch=8, input_size=128,
    # hidden_sizes=[128], num_labels=2 (-> 3 output classes incl. fake class).
    B, INPUT, HIDDEN, NUM_LABELS = 8, 128, 128, 2

    key = jax.random.PRNGKey(0)
    kx, kp = jax.random.split(key)
    x = jax.random.normal(kx, (B, INPUT), jnp.float32)
    w1, b1, w2, b2 = init_discriminator_params(kp, INPUT, HIDDEN, NUM_LABELS)

    # One-time parameter prep (pad + bf16 cast hoisted out of the forward).
    params = prepare_discriminator_params(w1, b1, w2, b2)

    last_rep, logits, probs = discriminator_forward(x, *params)
    jax.block_until_ready((last_rep, logits, probs))

    # Pure-JAX reference (eval-mode dropout = identity), using the same
    # bf16-input / f32-accumulation numerics as the kernel.
    xb = x.astype(jnp.bfloat16)
    w1b = w1.astype(jnp.bfloat16)
    w2b = w2.astype(jnp.bfloat16)
    h_ref = jnp.dot(xb, w1b, preferred_element_type=jnp.float32) + b1
    h_ref = jnp.where(h_ref >= 0, h_ref, 0.2 * h_ref)
    logits_ref = jnp.dot(h_ref.astype(jnp.bfloat16), w2b,
                         preferred_element_type=jnp.float32) + b2
    probs_ref = jax.nn.softmax(logits_ref, axis=-1)

    assert last_rep.shape == (B, HIDDEN)
    assert logits.shape == (B, NUM_LABELS + 1)
    assert probs.shape == (B, NUM_LABELS + 1)
    assert jnp.allclose(last_rep, h_ref, atol=1e-3, rtol=1e-3)
    assert jnp.allclose(logits, logits_ref, atol=1e-3, rtol=1e-3)
    # Looser tolerance for probs: pl.reciprocal(approx=True) has ~2^-12 rel err.
    assert jnp.allclose(probs, probs_ref, atol=2e-3, rtol=2e-3)

    print("KERNEL_OK")
</pallas_src>

<mosaic_0001>
module attributes {stable_mosaic.version = 11 : i64} {
  func.func @_discriminator_kernel(%arg0: i32, %arg1: memref<8x128xbf16, #tpu.memory_space<vmem>>, %arg2: memref<128x128xbf16, #tpu.memory_space<vmem>>, %arg3: memref<1x128xf32, #tpu.memory_space<vmem>>, %arg4: memref<128x128xbf16, #tpu.memory_space<vmem>>, %arg5: memref<1x128xf32, #tpu.memory_space<vmem>>, %arg6: memref<8x128xf32, #tpu.memory_space<vmem>>, %arg7: memref<8x128xf32, #tpu.memory_space<vmem>>, %arg8: memref<8x128xf32, #tpu.memory_space<vmem>>) attributes {dimension_semantics = [#tpu.dimension_semantics<parallel>], iteration_bounds = array<i64: 1>, scalar_prefetch = 0 : i64, scratch_operands = 0 : i64, tpu.core_type = #tpu.core_type<tc>, window_params = [{transform_indices = @transform_0, window_bounds = array<i64: 8, 128>}, {pipeline_mode = #tpu.pipeline_mode<synchronous>, transform_indices = @transform_1, window_bounds = array<i64: 128, 128>}, {pipeline_mode = #tpu.pipeline_mode<synchronous>, transform_indices = @transform_2, window_bounds = array<i64: 1, 128>}, {pipeline_mode = #tpu.pipeline_mode<synchronous>, transform_indices = @transform_3, window_bounds = array<i64: 128, 128>}, {pipeline_mode = #tpu.pipeline_mode<synchronous>, transform_indices = @transform_4, window_bounds = array<i64: 1, 128>}, {transform_indices = @transform_5, window_bounds = array<i64: 8, 128>}, {transform_indices = @transform_6, window_bounds = array<i64: 8, 128>}, {transform_indices = @transform_7, window_bounds = array<i64: 8, 128>}]} {
    %c0 = arith.constant 0 : index
    %c0_0 = arith.constant 0 : index
    %0 = vector.load %arg1[%c0, %c0_0] : memref<8x128xbf16, #tpu.memory_space<vmem>>, vector<8x128xbf16>
    %c0_1 = arith.constant 0 : index
    %c0_2 = arith.constant 0 : index
    %1 = vector.load %arg2[%c0_1, %c0_2] : memref<128x128xbf16, #tpu.memory_space<vmem>>, vector<128x128xbf16>
    %cst = arith.constant dense<0.000000e+00> : vector<8x128xf32>
    %2 = tpu.matmul %0, %1, %cst {dimension_numbers = #tpu.dot_dimension_numbers<[1], [0], [0], [1], [0, 0, 1, 1], [], []>} : vector<8x128xbf16>, vector<128x128xbf16>, vector<8x128xf32> -> vector<8x128xf32>
    %c0_3 = arith.constant 0 : index
    %c0_4 = arith.constant 0 : index
    %3 = vector.load %arg3[%c0_3, %c0_4] : memref<1x128xf32, #tpu.memory_space<vmem>>, vector<1x128xf32>
    %4 = vector.broadcast %3 : vector<1x128xf32> to vector<8x128xf32>
    %5 = arith.addf %2, %4 : vector<8x128xf32>
    %cst_5 = arith.constant 0.000000e+00 : f32
    %6 = vector.broadcast %cst_5 : f32 to vector<8x128xf32>
    %7 = arith.cmpf oge, %5, %6 : vector<8x128xf32>
    %cst_6 = arith.constant 2.000000e-01 : f32
    %8 = vector.broadcast %cst_6 : f32 to vector<8x128xf32>
    %9 = arith.mulf %8, %5 : vector<8x128xf32>
    %10 = arith.select %7, %5, %9 : vector<8x128xi1>, vector<8x128xf32>
    %c0_7 = arith.constant 0 : index
    %c0_8 = arith.constant 0 : index
    %11 = vector.load %arg6[%c0_7, %c0_8] : memref<8x128xf32, #tpu.memory_space<vmem>>, vector<8x128xf32>
    tpu.vector_store %arg6[%c0_7, %c0_8], %10 {strides = array<i32>} : memref<8x128xf32, #tpu.memory_space<vmem>>, vector<8x128xf32>,
    %12 = arith.truncf %10 : vector<8x128xf32> to vector<8x128xbf16>
    %c0_9 = arith.constant 0 : index
    %c0_10 = arith.constant 0 : index
    %13 = vector.load %arg4[%c0_9, %c0_10] : memref<128x128xbf16, #tpu.memory_space<vmem>>, vector<128x128xbf16>
    %cst_11 = arith.constant dense<0.000000e+00> : vector<8x128xf32>
    %14 = tpu.matmul %12, %13, %cst_11 {dimension_numbers = #tpu.dot_dimension_numbers<[1], [0], [0], [1], [0, 0, 1, 1], [], []>} : vector<8x128xbf16>, vector<128x128xbf16>, vector<8x128xf32> -> vector<8x128xf32>
    %c0_12 = arith.constant 0 : index
    %c0_13 = arith.constant 0 : index
    %15 = vector.load %arg5[%c0_12, %c0_13] : memref<1x128xf32, #tpu.memory_space<vmem>>, vector<1x128xf32>
    %16 = vector.broadcast %15 : vector<1x128xf32> to vector<8x128xf32>
    %17 = arith.addf %14, %16 : vector<8x128xf32>
    %c0_14 = arith.constant 0 : index
    %c0_15 = arith.constant 0 : index
    %18 = vector.load %arg7[%c0_14, %c0_15] : memref<8x128xf32, #tpu.memory_space<vmem>>, vector<8x128xf32>
    tpu.vector_store %arg7[%c0_14, %c0_15], %17 {strides = array<i32>} : memref<8x128xf32, #tpu.memory_space<vmem>>, vector<8x128xf32>,
    %cst_16 = arith.constant dense<0xFF800000> : vector<8xf32>
    %19 = vector.multi_reduction <maximumf>, %17, %cst_16 [1] : vector<8x128xf32> to vector<8xf32>
    %20 = vector.shape_cast %19 : vector<8xf32> to vector<8x1xf32>
    %21 = vector.broadcast %20 : vector<8x1xf32> to vector<8x128xf32>
    %22 = arith.subf %17, %21 : vector<8x128xf32>
    %23 = math.exp %22 : vector<8x128xf32>
    %cst_17 = arith.constant dense<0.000000e+00> : vector<8xf32>
    %24 = vector.multi_reduction <add>, %23, %cst_17 [1] : vector<8x128xf32> to vector<8xf32>
    %25 = vector.shape_cast %24 : vector<8xf32> to vector<8x1xf32>
    %26 = tpu.reciprocal %25 {approx = true} : vector<8x1xf32> -> vector<8x1xf32>
    %27 = vector.broadcast %26 : vector<8x1xf32> to vector<8x128xf32>
    %28 = arith.mulf %23, %27 : vector<8x128xf32>
    %c0_18 = arith.constant 0 : index
    %c0_19 = arith.constant 0 : index
    %29 = vector.load %arg8[%c0_18, %c0_19] : memref<8x128xf32, #tpu.memory_space<vmem>>, vector<8x128xf32>
    tpu.vector_store %arg8[%c0_18, %c0_19], %28 {strides = array<i32>} : memref<8x128xf32, #tpu.memory_space<vmem>>, vector<8x128xf32>,
    return
  }
  func.func @transform_0(%arg0: i32) -> (i32, i32) {
    %c0_i32 = arith.constant 0 : i32
    %c0_i32_0 = arith.constant 0 : i32
    return %arg0, %c0_i32 : i32, i32
  }
  func.func @transform_1(%arg0: i32) -> (i32, i32) {
    %c0_i32 = arith.constant 0 : i32
    %c0_i32_0 = arith.constant 0 : i32
    %c0_i32_1 = arith.constant 0 : i32
    return %c0_i32, %c0_i32_0 : i32, i32
  }
  func.func @transform_2(%arg0: i32) -> (i32, i32) {
    %c0_i32 = arith.constant 0 : i32
    %c0_i32_0 = arith.constant 0 : i32
    %c0_i32_1 = arith.constant 0 : i32
    return %c0_i32, %c0_i32_0 : i32, i32
  }
  func.func @transform_3(%arg0: i32) -> (i32, i32) {
    %c0_i32 = arith.constant 0 : i32
    %c0_i32_0 = arith.constant 0 : i32
    %c0_i32_1 = arith.constant 0 : i32
    return %c0_i32, %c0_i32_0 : i32, i32
  }
  func.func @transform_4(%arg0: i32) -> (i32, i32) {
    %c0_i32 = arith.constant 0 : i32
    %c0_i32_0 = arith.constant 0 : i32
    %c0_i32_1 = arith.constant 0 : i32
    return %c0_i32, %c0_i32_0 : i32, i32
  }
  func.func @transform_5(%arg0: i32) -> (i32, i32) {
    %c0_i32 = arith.constant 0 : i32
    %c0_i32_0 = arith.constant 0 : i32
    return %arg0, %c0_i32 : i32, i32
  }
  func.func @transform_6(%arg0: i32) -> (i32, i32) {
    %c0_i32 = arith.constant 0 : i32
    %c0_i32_0 = arith.constant 0 : i32
    return %arg0, %c0_i32 : i32, i32
  }
  func.func @transform_7(%arg0: i32) -> (i32, i32) {
    %c0_i32 = arith.constant 0 : i32
    %c0_i32_0 = arith.constant 0 : i32
    return %arg0, %c0_i32 : i32, i32
  }
}

module attributes {stable_mosaic.version = 11 : i64} {
  func.func @_discriminator_kernel(%arg0: i32, %arg1: memref<8x128xbf16, #tpu.memory_space<vmem>>, %arg2: memref<128x128xbf16, #tpu.memory_space<vmem>>, %arg3: memref<1x128xf32, #tpu.memory_space<vmem>>, %arg4: memref<128x128xbf16, #tpu.memory_space<vmem>>, %arg5: memref<1x128xf32, #tpu.memory_space<vmem>>, %arg6: memref<8x128xf32, #tpu.memory_space<vmem>>, %arg7: memref<8x128xf32, #tpu.memory_space<vmem>>, %arg8: memref<8x128xf32, #tpu.memory_space<vmem>>) attributes {dimension_semantics = [#tpu.dimension_semantics<parallel>], iteration_bounds = array<i64: 1>, scalar_prefetch = 0 : i64, scratch_operands = 0 : i64, tpu.core_type = #tpu.core_type<tc>, window_params = [{transform_indices = @transform_0, window_bounds = array<i64: 8, 128>}, {pipeline_mode = #tpu.pipeline_mode<synchronous>, transform_indices = @transform_1, window_bounds = array<i64: 128, 128>}, {pipeline_mode = #tpu.pipeline_mode<synchronous>, transform_indices = @transform_2, window_bounds = array<i64: 1, 128>}, {pipeline_mode = #tpu.pipeline_mode<synchronous>, transform_indices = @transform_3, window_bounds = array<i64: 128, 128>}, {pipeline_mode = #tpu.pipeline_mode<synchronous>, transform_indices = @transform_4, window_bounds = array<i64: 1, 128>}, {transform_indices = @transform_5, window_bounds = array<i64: 8, 128>}, {transform_indices = @transform_6, window_bounds = array<i64: 8, 128>}, {transform_indices = @transform_7, window_bounds = array<i64: 8, 128>}]} {
    %c0 = arith.constant 0 : index
    %c0_0 = arith.constant 0 : index
    %0 = vector.load %arg1[%c0, %c0_0] : memref<8x128xbf16, #tpu.memory_space<vmem>>, vector<8x128xbf16>
    %c0_1 = arith.constant 0 : index
    %c0_2 = arith.constant 0 : index
    %1 = vector.load %arg2[%c0_1, %c0_2] : memref<128x128xbf16, #tpu.memory_space<vmem>>, vector<128x128xbf16>
    %cst = arith.constant dense<0.000000e+00> : vector<8x128xf32>
    %2 = tpu.matmul %0, %1, %cst {dimension_numbers = #tpu.dot_dimension_numbers<[1], [0], [0], [1], [0, 0, 1, 1], [], []>} : vector<8x128xbf16>, vector<128x128xbf16>, vector<8x128xf32> -> vector<8x128xf32>
    %c0_3 = arith.constant 0 : index
    %c0_4 = arith.constant 0 : index
    %3 = vector.load %arg3[%c0_3, %c0_4] : memref<1x128xf32, #tpu.memory_space<vmem>>, vector<1x128xf32>
    %4 = vector.broadcast %3 : vector<1x128xf32> to vector<8x128xf32>
    %5 = arith.addf %2, %4 : vector<8x128xf32>
    %cst_5 = arith.constant 0.000000e+00 : f32
    %6 = vector.broadcast %cst_5 : f32 to vector<8x128xf32>
    %7 = arith.cmpf oge, %5, %6 : vector<8x128xf32>
    %cst_6 = arith.constant 2.000000e-01 : f32
    %8 = vector.broadcast %cst_6 : f32 to vector<8x128xf32>
    %9 = arith.mulf %8, %5 : vector<8x128xf32>
    %10 = arith.select %7, %5, %9 : vector<8x128xi1>, vector<8x128xf32>
    %c0_7 = arith.constant 0 : index
    %c0_8 = arith.constant 0 : index
    %11 = vector.load %arg6[%c0_7, %c0_8] : memref<8x128xf32, #tpu.memory_space<vmem>>, vector<8x128xf32>
    tpu.vector_store %arg6[%c0_7, %c0_8], %10 {strides = array<i32>} : memref<8x128xf32, #tpu.memory_space<vmem>>, vector<8x128xf32>,
    %12 = arith.truncf %10 : vector<8x128xf32> to vector<8x128xbf16>
    %c0_9 = arith.constant 0 : index
    %c0_10 = arith.constant 0 : index
    %13 = vector.load %arg4[%c0_9, %c0_10] : memref<128x128xbf16, #tpu.memory_space<vmem>>, vector<128x128xbf16>
    %cst_11 = arith.constant dense<0.000000e+00> : vector<8x128xf32>
    %14 = tpu.matmul %12, %13, %cst_11 {dimension_numbers = #tpu.dot_dimension_numbers<[1], [0], [0], [1], [0, 0, 1, 1], [], []>} : vector<8x128xbf16>, vector<128x128xbf16>, vector<8x128xf32> -> vector<8x128xf32>
    %c0_12 = arith.constant 0 : index
    %c0_13 = arith.constant 0 : index
    %15 = vector.load %arg5[%c0_12, %c0_13] : memref<1x128xf32, #tpu.memory_space<vmem>>, vector<1x128xf32>
    %16 = vector.broadcast %15 : vector<1x128xf32> to vector<8x128xf32>
    %17 = arith.addf %14, %16 : vector<8x128xf32>
    %c0_14 = arith.constant 0 : index
    %c0_15 = arith.constant 0 : index
    %18 = vector.load %arg7[%c0_14, %c0_15] : memref<8x128xf32, #tpu.memory_space<vmem>>, vector<8x128xf32>
    tpu.vector_store %arg7[%c0_14, %c0_15], %17 {strides = array<i32>} : memref<8x128xf32, #tpu.memory_space<vmem>>, vector<8x128xf32>,
    %cst_16 = arith.constant dense<0xFF800000> : vector<8xf32>
    %19 = vector.multi_reduction <maximumf>, %17, %cst_16 [1] : vector<8x128xf32> to vector<8xf32>
    %20 = vector.shape_cast %19 : vector<8xf32> to vector<8x1xf32>
    %21 = vector.broadcast %20 : vector<8x1xf32> to vector<8x128xf32>
    %22 = arith.subf %17, %21 : vector<8x128xf32>
    %23 = math.exp %22 : vector<8x128xf32>
    %cst_17 = arith.constant dense<0.000000e+00> : vector<8xf32>
    %24 = vector.multi_reduction <add>, %23, %cst_17 [1] : vector<8x128xf32> to vector<8xf32>
    %25 = vector.shape_cast %24 : vector<8xf32> to vector<8x1xf32>
    %26 = tpu.reciprocal %25 {approx = true} : vector<8x1xf32> -> vector<8x1xf32>
    %27 = vector.broadcast %26 : vector<8x1xf32> to vector<8x128xf32>
    %28 = arith.mulf %23, %27 : vector<8x128xf32>
    %c0_18 = arith.constant 0 : index
    %c0_19 = arith.constant 0 : index
    %29 = vector.load %arg8[%c0_18, %c0_19] : memref<8x128xf32, #tpu.memory_space<vmem>>, vector<8x128xf32>
    tpu.vector_store %arg8[%c0_18, %c0_19], %28 {strides = array<i32>} : memref<8x128xf32, #tpu.memory_space<vmem>>, vector<8x128xf32>,
    return
  }
  func.func @transform_0(%arg0: i32) -> (i32, i32) {
    %c0_i32 = arith.constant 0 : i32
    %c0_i32_0 = arith.constant 0 : i32
    return %arg0, %c0_i32 : i32, i32
  }
  func.func @transform_1(%arg0: i32) -> (i32, i32) {
    %c0_i32 = arith.constant 0 : i32
    %c0_i32_0 = arith.constant 0 : i32
    %c0_i32_1 = arith.constant 0 : i32
    return %c0_i32, %c0_i32_0 : i32, i32
  }
  func.func @transform_2(%arg0: i32) -> (i32, i32) {
    %c0_i32 = arith.constant 0 : i32
    %c0_i32_0 = arith.constant 0 : i32
    %c0_i32_1 = arith.constant 0 : i32
    return %c0_i32, %c0_i32_0 : i32, i32
  }
  func.func @transform_3(%arg0: i32) -> (i32, i32) {
    %c0_i32 = arith.constant 0 : i32
    %c0_i32_0 = arith.constant 0 : i32
    %c0_i32_1 = arith.constant 0 : i32
    return %c0_i32, %c0_i32_0 : i32, i32
  }
  func.func @transform_4(%arg0: i32) -> (i32, i32) {
    %c0_i32 = arith.constant 0 : i32
    %c0_i32_0 = arith.constant 0 : i32
    %c0_i32_1 = arith.constant 0 : i32
    return %c0_i32, %c0_i32_0 : i32, i32
  }
  func.func @transform_5(%arg0: i32) -> (i32, i32) {
    %c0_i32 = arith.constant 0 : i32
    %c0_i32_0 = arith.constant 0 : i32
    return %arg0, %c0_i32 : i32, i32
  }
  func.func @transform_6(%arg0: i32) -> (i32, i32) {
    %c0_i32 = arith.constant 0 : i32
    %c0_i32_0 = arith.constant 0 : i32
    return %arg0, %c0_i32 : i32, i32
  }
  func.func @transform_7(%arg0: i32) -> (i32, i32) {
    %c0_i32 = arith.constant 0 : i32
    %c0_i32_0 = arith.constant 0 : i32
    return %arg0, %c0_i32 : i32, i32
  }
}

</mosaic_0001>

<bundles_post_ra>
// kernel: tpu_custom_call.1
= control target key start
LH: loop header
LB: loop body
LE: loop exit
PB: predicated region body
PF: predicated region fallthrough
CT: control target
= control target key end

     0   :  { %13 = vsyncpa [#allocation3], 0  ;;  %s727_s0 = inlined_call_operand.hbm [shape: bf16[8,128], index: 0, kind: input, shape index: {}]   ;;  %s728_s1 = inlined_call_operand.hbm [shape: bf16[128,128], index: 1, kind: input, shape index: {}]   ;;  %s729_s2 = inlined_call_operand.vmem [shape: f32[1,128], index: 2, kind: input, shape index: {}]   ;;  %s730_s3 = inlined_call_operand.hbm [shape: bf16[128,128], index: 3, kind: input, shape index: {}]   ;;  %s731_s4 = inlined_call_operand.vmem [shape: f32[1,128], index: 4, kind: input, shape index: {}]   ;;  %s732_s5 = inlined_call_operand.hbm [shape: f32[8,128], index: 5, kind: output, shape index: {0}]   ;;  %s733_s6 = inlined_call_operand.hbm [shape: f32[8,128], index: 6, kind: output, shape index: {1}]   ;;  %s734_s7 = inlined_call_operand.hbm [shape: f32[8,128], index: 7, kind: output, shape index: {2}]  }
   0x1   :  { %14 = vsyncpa [#allocation6], 0 }
   0x2   :  { %15 = vsyncpa [#allocation4], 0 }
   0x3   :  { %16 = vsyncpa [#allocation10], 0  ;;  %s593_s24 = smov [#allocation5]   ;;  %s453_s28 = scalar_lea.hbm %s728_s1, 1024 }
   0x4   :  { %s32_s25 = sshll.u32 %s593_s24, 4  ;;  %p454_p0 = scmp.ne.s32.totalorder %s728_s1, %s453_s28  ;;  %s33_s25 = int_to_ptr.vmem [resolvable:$true] %s32_s25 }
   0x5   :  { %p457_p1 = scmp.lt.u32.totalorder %s453_s28, %s728_s1 }
   0x7   :  { %p459_p2 = pnand %p457_p1, %p454_p0 }
   0x9   :  { %462 = shalt.err (!%p459_p2)
}
   0xa   :  { %s463_s10 = scalar_lea.vmem %s33_s25, 1024  ;;  %p468_p4 = scmp.lt.s32.totalorder %s33_s25, %s33_s25 }
   0xb   :  { %p464_p3 = scmp.ne.s32.totalorder %s33_s25, %s463_s10  ;;  %p469_p5 = scmp.lt.s32.totalorder %s463_s10, %s463_s10 }
   0xd   :  { %p470_p6 = por %p469_p5, %p468_p4 }
   0xf   :  { %p471_p7 = pnand %p470_p6, %p464_p3 }
  0x11   :  { %474 = shalt.err (!%p471_p7)
}
  0x12   :  { %s594_s11 = smov 64   ;;  %s595_s12 = smov 4  }
  0x13   :  { %38 = dma.hbm_to_vmem [thread:$0]  %s728_s1, 1024, %s33_s25, [#allocation6], %s594_s11, %s594_s11, %s595_s12  }
  0x14   :  { %s596_s15 = smov [#allocation2]   ;;  %s597_s17 = smov [#allocation7]  }
  0x15   :  { %s23_s16 = sshll.u32 %s596_s15, 4  ;;  %s46_s18 = sshll.u32 %s597_s17, 4  ;;  %s24_s16 = int_to_ptr.vmem [resolvable:$true] %s23_s16  ;;  %s47_s18 = int_to_ptr.vmem [resolvable:$true] %s46_s18 }
  0x16   :  { %s475_s21 = scalar_lea.hbm %s727_s0, 64 }
  0x17   :  { %p476_p8 = scmp.ne.s32.totalorder %s727_s0, %s475_s21  ;;  %p479_p9 = scmp.lt.u32.totalorder %s475_s21, %s727_s0 }
  0x19   :  { %p481_p10 = pnand %p479_p9, %p476_p8 }
  0x1b   :  { %484 = shalt.err (!%p481_p10)
}
  0x1c   :  { %s485_s1 = scalar_lea.vmem %s24_s16, 64  ;;  %p490_p12 = scmp.lt.s32.totalorder %s24_s16, %s24_s16 }
  0x1d   :  { %p486_p11 = scmp.ne.s32.totalorder %s24_s16, %s485_s1  ;;  %p491_p13 = scmp.lt.s32.totalorder %s485_s1, %s485_s1 }
  0x1f   :  { %p492_p0 = por %p491_p13, %p490_p12 }
  0x21   :  { %p493_p1 = pnand %p492_p0, %p486_p11 }
  0x23   :  { %496 = shalt.err (!%p493_p1)
}
  0x24   :  { %26 = dma.hbm_to_vmem [thread:$0]  %s727_s0, 64, %s24_s16, [#allocation3]  }
  0x25   :  { %s497_s30 = scalar_lea.hbm %s730_s3, 1024 }
  0x26   :  { %p498_p2 = scmp.ne.s32.totalorder %s730_s3, %s497_s30  ;;  %p501_p3 = scmp.lt.u32.totalorder %s497_s30, %s730_s3 }
  0x28   :  { %p503_p4 = pnand %p501_p3, %p498_p2 }
  0x2a   :  { %506 = shalt.err (!%p503_p4)
}
  0x2b   :  { %s507_s14 = scalar_lea.vmem %s47_s18, 1024  ;;  %p512_p6 = scmp.lt.s32.totalorder %s47_s18, %s47_s18 }
  0x2c   :  { %p508_p5 = scmp.ne.s32.totalorder %s47_s18, %s507_s14  ;;  %p513_p7 = scmp.lt.s32.totalorder %s507_s14, %s507_s14 }
  0x2e   :  { %p514_p8 = por %p513_p7, %p512_p6 }
  0x30   :  { %p515_p9 = pnand %p514_p8, %p508_p5 }
  0x32   :  { %518 = shalt.err (!%p515_p9)
}
  0x33   :  { %52 = dma.hbm_to_vmem [thread:$0]  %s730_s3, 1024, %s47_s18, [#allocation6], %s594_s11, %s594_s11, %s595_s12  }
  0x34   :  { %585 = dma.done.wait [#allocation3], 64  }
  0x35   :  { %586 = vsyncadd [#allocation3], 4294967232 }
  0x36   :  { %587 = dma.done.wait [#allocation6], 2048  }
  0x37   :  { %588 = vsyncadd [#allocation6], 4294965248  ;;  %v598_v0 = vmov 0.0   ;;  %vm599_vm0 = vmmov 0   ;;  %v433_v1 = vld [vmem:[#allocation5] sm:$0xff]   ;;  %v434_v2 = vld [vmem:[#allocation5 + $0x8] sm:$0xff]  }
  0x38   :  { %383 = vmatprep.subr.bf16.mxu0 %v598_v0  ;;  %399 = vmatprep.mubr.msk.bf16.mxu0 %vm599_vm0, %v598_v0  ;;  %v435_v3 = vld [vmem:[#allocation5 + $0x10] sm:$0xff]   ;;  %v441_v4 = vld [vmem:[#allocation7] sm:$0xff]   ;;  %v436_v5 = vld [vmem:[#allocation5 + $0x18] sm:$0xff]   ;;  %s601_s18 = smov [#allocation8]  }
  0x39   :  { %403 = vmatprep.subr.bf16.mxu1 %v598_v0  ;;  %419 = vmatprep.mubr.msk.bf16.mxu1 %vm599_vm0, %v598_v0  ;;  %v442_v6 = vld [vmem:[#allocation7 + $0x8] sm:$0xff]   ;;  %v437_v7 = vld [vmem:[#allocation5 + $0x20] sm:$0xff]   ;;  %v443_v8 = vld [vmem:[#allocation7 + $0x10] sm:$0xff]   ;;  %s310_s19 = sshll.u32 %s601_s18, 4  ;;  %s311_s19 = int_to_ptr.vmem [resolvable:$true] %s310_s19 }
  0x3a   :  { %384 = vmatpush3.bf16.msra.mxu0 %v433_v1  ;;  %404 = vmatpush3.bf16.msra.mxu1 %v441_v4  ;;  %v438_v9 = vld [vmem:[#allocation5 + $0x28] sm:$0xff]   ;;  %v444_v10 = vld [vmem:[#allocation7 + $0x18] sm:$0xff]   ;;  %v439_v11 = vld [vmem:[#allocation5 + $0x30] sm:$0xff]  }
  0x3b   :  { %385 = vmatprep.subr.bf16.mxu0 %v598_v0  ;;  %405 = vmatprep.subr.bf16.mxu1 %v598_v0  ;;  %v445_v12 = vld [vmem:[#allocation7 + $0x20] sm:$0xff]   ;;  %v440_v13 = vld [vmem:[#allocation5 + $0x38] sm:$0xff]   ;;  %v446_v14 = vld [vmem:[#allocation7 + $0x28] sm:$0xff]  }
  0x3c   :  { %v65_v15 = vld [vmem:[#allocation2] sm:$0xf]  ;;  %v447_v16 = vld [vmem:[#allocation7 + $0x30] sm:$0xff]  }
  0x3d   :  { %v448_v17 = vld [vmem:[#allocation7 + $0x38] sm:$0xff]  }
  0x3e   :  { %386 = vmatpush3.bf16.msra.mxu0 %v434_v2  ;;  %406 = vmatpush3.bf16.msra.mxu1 %v442_v6  ;;  %v347_v18 = vld [vmem:[%s729_s2] ss:$0 sm:$0xff]  ;;  %s600_s2 = smov [#allocation9]  }
  0x3f   :  { %387 = vmatprep.subr.bf16.mxu0 %v598_v0  ;;  %407 = vmatprep.subr.bf16.mxu1 %v598_v0  ;;  %v356_v27 = vld [vmem:[%s731_s4] ss:$0 sm:$0xff]  ;;  %s320_s17 = sshll.u32 %s600_s2, 4  ;;  %s321_s17 = int_to_ptr.vmem [resolvable:$true] %s320_s17 }
  0x40   :  { %s519_s4 = scalar_lea.vmem %s321_s17, 128  ;;  %p524_p11 = scmp.lt.s32.totalorder %s321_s17, %s321_s17 }
  0x41   :  { %p520_p10 = scmp.ne.s32.totalorder %s321_s17, %s519_s4  ;;  %p525_p12 = scmp.lt.s32.totalorder %s519_s4, %s519_s4 }
  0x42   :  { %388 = vmatpush3.bf16.msra.mxu0 %v435_v3  ;;  %408 = vmatpush3.bf16.msra.mxu1 %v443_v8 }
  0x43   :  { %389 = vmatprep.subr.bf16.mxu0 %v598_v0  ;;  %409 = vmatprep.subr.bf16.mxu1 %v598_v0  ;;  %p526_p13 = por %p525_p12, %p524_p11 }
  0x45   :  { %p527_p0 = pnand %p526_p13, %p520_p10 }
  0x46   :  { %390 = vmatpush3.bf16.msra.mxu0 %v436_v5  ;;  %410 = vmatpush3.bf16.msra.mxu1 %v444_v10 }
  0x47   :  { %391 = vmatprep.subr.bf16.mxu0 %v598_v0  ;;  %411 = vmatprep.subr.bf16.mxu1 %v598_v0 }
  0x4a   :  { %392 = vmatpush3.bf16.msra.mxu0 %v437_v7  ;;  %412 = vmatpush3.bf16.msra.mxu1 %v445_v12 }
  0x4b   :  { %393 = vmatprep.subr.bf16.mxu0 %v598_v0  ;;  %413 = vmatprep.subr.bf16.mxu1 %v598_v0 }
  0x4e   :  { %394 = vmatpush3.bf16.msra.mxu0 %v438_v9  ;;  %414 = vmatpush3.bf16.msra.mxu1 %v446_v14 }
  0x4f   :  { %395 = vmatprep.subr.bf16.mxu0 %v598_v0  ;;  %415 = vmatprep.subr.bf16.mxu1 %v598_v0 }
  0x52   :  { %396 = vmatpush3.bf16.msra.mxu0 %v439_v11  ;;  %416 = vmatpush3.bf16.msra.mxu1 %v447_v16 }
  0x53   :  { %397 = vmatprep.subr.bf16.mxu0 %v598_v0  ;;  %417 = vmatprep.subr.bf16.mxu1 %v598_v0 }
  0x56   :  { %398 = vmatpush3.bf16.msra.mxu0 %v440_v13  ;;  %418 = vmatpush3.bf16.msra.mxu1 %v448_v17 }
  0x59   :  { %400 = vmatmul.mubr.bf16.vlgmr.msra.gmra.mrb[0].mxu0 %v65_v15 }
 0x12c   :  { %v171_v19 = vpop.f32.mrb[0].mxu0 }
 0x12d   :  { %v172_v20 = vadd.f32 %v347_v18, %v171_v19  ;;  %v401_v21 = vpop.f32.mrb[1].mxu0 }
 0x12e   :  { %v174_v22 = vpop.f32.mrb[2].mxu0 }
 0x12f   :  { %vm177_vm1 = vcmp.ge.f32.partialorder %v172_v20, 0.0  ;;  %v178_v23 = vmul.f32 0.2, %v172_v20  ;;  %v402_v24 = vpop.f32.mrb[3].mxu0 }
 0x131   :  { %v179_v25 = vsel %vm177_vm1, %v172_v20, %v178_v23 }
 0x132   :  { %v181_v26 = vpack.c.bf16 %v179_v25, %v179_v25  ;;  %180 = vst [vmem:[#allocation8] sm:$0xff] %v179_v25 }
 0x134   :  { %420 = vmatmul.mubr.bf16.vlgmr.msra.gmra.mrb[0].mxu1 %v181_v26 }
 0x207   :  { %v287_v28 = vpop.f32.mrb[0].mxu1 }
 0x208   :  { %v288_v29 = vadd.f32 %v356_v27, %v287_v28  ;;  %v421_v30 = vpop.f32.mrb[1].mxu1 }
 0x209   :  { %v290_v31 = vpop.f32.mrb[2].mxu1 }
 0x20a   :  { %293 = vst [vmem:[#allocation9] sm:$0xff] %v288_v29  ;;  %294 = vmax.xlane.f32.xlu0 %v288_v29  ;;  %v422_v32 = vpop.f32.mrb[3].mxu1 }
 0x297   :  { %v295_v33 = vpop.xlane.xlu0 %294 }
 0x298   :  { %v296_v34 = vsub.f32 %v288_v29, %v295_v33 }
 0x29a   :  { %v297_v35 = vmul.f32 1.442695, %v296_v34 }
 0x29c   :  { %449 = vpow2.f32 %v297_v35 }
 0x2a6   :  { %v450_v36 = vpop.eup %449 }
 0x2a7   :  { %299 = vadd.xlane.f32.xlu0 %v450_v36 }
 0x2a8   :  { %530 = shalt.err (!%p527_p0)
}
 0x2a9   :  { %s531_s22 = scalar_lea.hbm %s733_s6, 128 }
 0x2aa   :  { %p532_p1 = scmp.ne.s32.totalorder %s733_s6, %s531_s22  ;;  %p535_p2 = scmp.lt.u32.totalorder %s531_s22, %s733_s6 }
 0x2ac   :  { %p537_p3 = pnand %p535_p2, %p532_p1 }
 0x2ae   :  { %540 = shalt.err (!%p537_p3)
}
 0x2af   :  { %323 = dma.vmem_to_hbm [thread:$0]  %s321_s17, 128, %s733_s6, [#allocation10]  }
 0x2b0   :  { %s541_s28 = scalar_lea.vmem %s311_s19, 128  ;;  %p546_p5 = scmp.lt.s32.totalorder %s311_s19, %s311_s19 }
 0x2b1   :  { %p542_p4 = scmp.ne.s32.totalorder %s311_s19, %s541_s28  ;;  %p547_p6 = scmp.lt.s32.totalorder %s541_s28, %s541_s28 }
 0x2b3   :  { %p548_p7 = por %p547_p6, %p546_p5 }
 0x2b5   :  { %p549_p8 = pnand %p548_p7, %p542_p4 }
 0x2b7   :  { %552 = shalt.err (!%p549_p8)
}
 0x2b8   :  { %s553_s8 = scalar_lea.hbm %s732_s5, 128 }
 0x2b9   :  { %p554_p9 = scmp.ne.s32.totalorder %s732_s5, %s553_s8  ;;  %p557_p10 = scmp.lt.u32.totalorder %s553_s8, %s732_s5 }
 0x2bb   :  { %p559_p11 = pnand %p557_p10, %p554_p9 }
 0x2bd   :  { %562 = shalt.err (!%p559_p11)
}
 0x2be   :  { %313 = dma.vmem_to_hbm [thread:$0]  %s311_s19, 128, %s732_s5, [#allocation4]  }
 0x2bf   :  { %s602_s15 = smov [#allocation11]  }
 0x2c0   :  { %s330_s3 = sshll.u32 %s602_s15, 4  ;;  %s331_s3 = int_to_ptr.vmem [resolvable:$true] %s330_s3 }
 0x2c1   :  { %s563_s11 = scalar_lea.vmem %s331_s3, 128  ;;  %p568_p13 = scmp.lt.s32.totalorder %s331_s3, %s331_s3 }
 0x2c2   :  { %p564_p12 = scmp.ne.s32.totalorder %s331_s3, %s563_s11  ;;  %p569_p0 = scmp.lt.s32.totalorder %s563_s11, %s563_s11 }
 0x2c4   :  { %p570_p1 = por %p569_p0, %p568_p13 }
 0x2c6   :  { %p571_p2 = pnand %p570_p1, %p564_p12 }
 0x334   :  { %v300_v37 = vpop.xlane.xlu0 %299 }
 0x335   :  { %451 = vrcp.f32 %v300_v37 }
 0x33f   :  { %v452_v38 = vpop.eup %451 }
 0x340   :  { %v302_v39 = vmul.f32 %v452_v38, %v450_v36 }
 0x342   :  { %303 = vst [vmem:[#allocation11] sm:$0xff] %v302_v39 }
 0x343   :  { %574 = shalt.err (!%p571_p2)
}
 0x344   :  { %s575_s2 = scalar_lea.hbm %s734_s7, 128 }
 0x345   :  { %p576_p3 = scmp.ne.s32.totalorder %s734_s7, %s575_s2  ;;  %p579_p4 = scmp.lt.u32.totalorder %s575_s2, %s734_s7 }
 0x347   :  { %p581_p5 = pnand %p579_p4, %p576_p3 }
 0x349   :  { %584 = shalt.err (!%p581_p5)
}
 0x34a   :  { %333 = dma.vmem_to_hbm [thread:$0]  %s331_s3, 128, %s734_s7, [#allocation10]  }
 0x34b   :  { %589 = dma.done.wait [#allocation4], 128  }
 0x34c   :  { %590 = vsyncadd [#allocation4], 4294967168 }
 0x34d   :  { %591 = dma.done.wait [#allocation10], 256  }
 0x34e   :  { %592 = vsyncadd [#allocation10], 4294967040 }
 0x34f   :  { %343 = vsyncpa [#allocation3], 1 }
 0x350   :  { %344 = vsyncpa [#allocation6], 1 }
 0x351   :  { %345 = vsyncpa [#allocation4], 1 }
 0x352   :  { %346 = vsyncpa [#allocation10], 1 }

// kernel: tpu_custom_call.1
= control target key start
LH: loop header
LB: loop body
LE: loop exit
PB: predicated region body
PF: predicated region fallthrough
CT: control target
= control target key end

     0   :  { %13 = vsyncpa [#allocation3], 0  ;;  %s727_s0 = inlined_call_operand.hbm [shape: bf16[8,128], index: 0, kind: input, shape index: {}]   ;;  %s728_s1 = inlined_call_operand.hbm [shape: bf16[128,128], index: 1, kind: input, shape index: {}]   ;;  %s729_s2 = inlined_call_operand.vmem [shape: f32[1,128], index: 2, kind: input, shape index: {}]   ;;  %s730_s3 = inlined_call_operand.hbm [shape: bf16[128,128], index: 3, kind: input, shape index: {}]   ;;  %s731_s4 = inlined_call_operand.vmem [shape: f32[1,128], index: 4, kind: input, shape index: {}]   ;;  %s732_s5 = inlined_call_operand.hbm [shape: f32[8,128], index: 5, kind: output, shape index: {0}]   ;;  %s733_s6 = inlined_call_operand.hbm [shape: f32[8,128], index: 6, kind: output, shape index: {1}]   ;;  %s734_s7 = inlined_call_operand.hbm [shape: f32[8,128], index: 7, kind: output, shape index: {2}]  }
   0x1   :  { %14 = vsyncpa [#allocation6], 0 }
   0x2   :  { %15 = vsyncpa [#allocation4], 0 }
   0x3   :  { %16 = vsyncpa [#allocation10], 0  ;;  %s593_s24 = smov [#allocation5]   ;;  %s453_s28 = scalar_lea.hbm %s728_s1, 1024 }
   0x4   :  { %s32_s25 = sshll.u32 %s593_s24, 4  ;;  %p454_p0 = scmp.ne.s32.totalorder %s728_s1, %s453_s28  ;;  %s33_s25 = int_to_ptr.vmem [resolvable:$true] %s32_s25 }
   0x5   :  { %p457_p1 = scmp.lt.u32.totalorder %s453_s28, %s728_s1 }
   0x7   :  { %p459_p2 = pnand %p457_p1, %p454_p0 }
   0x9   :  { %462 = shalt.err (!%p459_p2)
}
   0xa   :  { %s463_s10 = scalar_lea.vmem %s33_s25, 1024  ;;  %p468_p4 = scmp.lt.s32.totalorder %s33_s25, %s33_s25 }
   0xb   :  { %p464_p3 = scmp.ne.s32.totalorder %s33_s25, %s463_s10  ;;  %p469_p5 = scmp.lt.s32.totalorder %s463_s10, %s463_s10 }
   0xd   :  { %p470_p6 = por %p469_p5, %p468_p4 }
   0xf   :  { %p471_p7 = pnand %p470_p6, %p464_p3 }
  0x11   :  { %474 = shalt.err (!%p471_p7)
}
  0x12   :  { %s594_s11 = smov 64   ;;  %s595_s12 = smov 4  }
  0x13   :  { %38 = dma.hbm_to_vmem [thread:$0]  %s728_s1, 1024, %s33_s25, [#allocation6], %s594_s11, %s594_s11, %s595_s12  }
  0x14   :  { %s596_s15 = smov [#allocation2]   ;;  %s597_s17 = smov [#allocation7]  }
  0x15   :  { %s23_s16 = sshll.u32 %s596_s15, 4  ;;  %s46_s18 = sshll.u32 %s597_s17, 4  ;;  %s24_s16 = int_to_ptr.vmem [resolvable:$true] %s23_s16  ;;  %s47_s18 = int_to_ptr.vmem [resolvable:$true] %s46_s18 }
  0x16   :  { %s475_s21 = scalar_lea.hbm %s727_s0, 64 }
  0x17   :  { %p476_p8 = scmp.ne.s32.totalorder %s727_s0, %s475_s21  ;;  %p479_p9 = scmp.lt.u32.totalorder %s475_s21, %s727_s0 }
  0x19   :  { %p481_p10 = pnand %p479_p9, %p476_p8 }
  0x1b   :  { %484 = shalt.err (!%p481_p10)
}
  0x1c   :  { %s485_s1 = scalar_lea.vmem %s24_s16, 64  ;;  %p490_p12 = scmp.lt.s32.totalorder %s24_s16, %s24_s16 }
  0x1d   :  { %p486_p11 = scmp.ne.s32.totalorder %s24_s16, %s485_s1  ;;  %p491_p13 = scmp.lt.s32.totalorder %s485_s1, %s485_s1 }
  0x1f   :  { %p492_p0 = por %p491_p13, %p490_p12 }
  0x21   :  { %p493_p1 = pnand %p492_p0, %p486_p11 }
  0x23   :  { %496 = shalt.err (!%p493_p1)
}
  0x24   :  { %26 = dma.hbm_to_vmem [thread:$0]  %s727_s0, 64, %s24_s16, [#allocation3]  }
  0x25   :  { %s497_s30 = scalar_lea.hbm %s730_s3, 1024 }
  0x26   :  { %p498_p2 = scmp.ne.s32.totalorder %s730_s3, %s497_s30  ;;  %p501_p3 = scmp.lt.u32.totalorder %s497_s30, %s730_s3 }
  0x28   :  { %p503_p4 = pnand %p501_p3, %p498_p2 }
  0x2a   :  { %506 = shalt.err (!%p503_p4)
}
  0x2b   :  { %s507_s14 = scalar_lea.vmem %s47_s18, 1024  ;;  %p512_p6 = scmp.lt.s32.totalorder %s47_s18, %s47_s18 }
  0x2c   :  { %p508_p5 = scmp.ne.s32.totalorder %s47_s18, %s507_s14  ;;  %p513_p7 = scmp.lt.s32.totalorder %s507_s14, %s507_s14 }
  0x2e   :  { %p514_p8 = por %p513_p7, %p512_p6 }
  0x30   :  { %p515_p9 = pnand %p514_p8, %p508_p5 }
  0x32   :  { %518 = shalt.err (!%p515_p9)
}
  0x33   :  { %52 = dma.hbm_to_vmem [thread:$0]  %s730_s3, 1024, %s47_s18, [#allocation6], %s594_s11, %s594_s11, %s595_s12  }
  0x34   :  { %585 = dma.done.wait [#allocation3], 64  }
  0x35   :  { %586 = vsyncadd [#allocation3], 4294967232 }
  0x36   :  { %587 = dma.done.wait [#allocation6], 2048  }
  0x37   :  { %588 = vsyncadd [#allocation6], 4294965248  ;;  %v598_v0 = vmov 0.0   ;;  %vm599_vm0 = vmmov 0   ;;  %v433_v1 = vld [vmem:[#allocation5] sm:$0xff]   ;;  %v434_v2 = vld [vmem:[#allocation5 + $0x8] sm:$0xff]  }
  0x38   :  { %383 = vmatprep.subr.bf16.mxu0 %v598_v0  ;;  %399 = vmatprep.mubr.msk.bf16.mxu0 %vm599_vm0, %v598_v0  ;;  %v435_v3 = vld [vmem:[#allocation5 + $0x10] sm:$0xff]   ;;  %v441_v4 = vld [vmem:[#allocation7] sm:$0xff]   ;;  %v436_v5 = vld [vmem:[#allocation5 + $0x18] sm:$0xff]   ;;  %s601_s18 = smov [#allocation8]  }
  0x39   :  { %403 = vmatprep.subr.bf16.mxu1 %v598_v0  ;;  %419 = vmatprep.mubr.msk.bf16.mxu1 %vm599_vm0, %v598_v0  ;;  %v442_v6 = vld [vmem:[#allocation7 + $0x8] sm:$0xff]   ;;  %v437_v7 = vld [vmem:[#allocation5 + $0x20] sm:$0xff]   ;;  %v443_v8 = vld [vmem:[#allocation7 + $0x10] sm:$0xff]   ;;  %s310_s19 = sshll.u32 %s601_s18, 4  ;;  %s311_s19 = int_to_ptr.vmem [resolvable:$true] %s310_s19 }
  0x3a   :  { %384 = vmatpush3.bf16.msra.mxu0 %v433_v1  ;;  %404 = vmatpush3.bf16.msra.mxu1 %v441_v4  ;;  %v438_v9 = vld [vmem:[#allocation5 + $0x28] sm:$0xff]   ;;  %v444_v10 = vld [vmem:[#allocation7 + $0x18] sm:$0xff]   ;;  %v439_v11 = vld [vmem:[#allocation5 + $0x30] sm:$0xff]  }
  0x3b   :  { %385 = vmatprep.subr.bf16.mxu0 %v598_v0  ;;  %405 = vmatprep.subr.bf16.mxu1 %v598_v0  ;;  %v445_v12 = vld [vmem:[#allocation7 + $0x20] sm:$0xff]   ;;  %v440_v13 = vld [vmem:[#allocation5 + $0x38] sm:$0xff]   ;;  %v446_v14 = vld [vmem:[#allocation7 + $0x28] sm:$0xff]  }
  0x3c   :  { %v65_v15 = vld [vmem:[#allocation2] sm:$0xf]  ;;  %v447_v16 = vld [vmem:[#allocation7 + $0x30] sm:$0xff]  }
  0x3d   :  { %v448_v17 = vld [vmem:[#allocation7 + $0x38] sm:$0xff]  }
  0x3e   :  { %386 = vmatpush3.bf16.msra.mxu0 %v434_v2  ;;  %406 = vmatpush3.bf16.msra.mxu1 %v442_v6  ;;  %v347_v18 = vld [vmem:[%s729_s2] ss:$0 sm:$0xff]  ;;  %s600_s2 = smov [#allocation9]  }
  0x3f   :  { %387 = vmatprep.subr.bf16.mxu0 %v598_v0  ;;  %407 = vmatprep.subr.bf16.mxu1 %v598_v0  ;;  %v356_v27 = vld [vmem:[%s731_s4] ss:$0 sm:$0xff]  ;;  %s320_s17 = sshll.u32 %s600_s2, 4  ;;  %s321_s17 = int_to_ptr.vmem [resolvable:$true] %s320_s17 }
  0x40   :  { %s519_s4 = scalar_lea.vmem %s321_s17, 128  ;;  %p524_p11 = scmp.lt.s32.totalorder %s321_s17, %s321_s17 }
  0x41   :  { %p520_p10 = scmp.ne.s32.totalorder %s321_s17, %s519_s4  ;;  %p525_p12 = scmp.lt.s32.totalorder %s519_s4, %s519_s4 }
  0x42   :  { %388 = vmatpush3.bf16.msra.mxu0 %v435_v3  ;;  %408 = vmatpush3.bf16.msra.mxu1 %v443_v8 }
  0x43   :  { %389 = vmatprep.subr.bf16.mxu0 %v598_v0  ;;  %409 = vmatprep.subr.bf16.mxu1 %v598_v0  ;;  %p526_p13 = por %p525_p12, %p524_p11 }
  0x45   :  { %p527_p0 = pnand %p526_p13, %p520_p10 }
  0x46   :  { %390 = vmatpush3.bf16.msra.mxu0 %v436_v5  ;;  %410 = vmatpush3.bf16.msra.mxu1 %v444_v10 }
  0x47   :  { %391 = vmatprep.subr.bf16.mxu0 %v598_v0  ;;  %411 = vmatprep.subr.bf16.mxu1 %v598_v0 }
  0x4a   :  { %392 = vmatpush3.bf16.msra.mxu0 %v437_v7  ;;  %412 = vmatpush3.bf16.msra.mxu1 %v445_v12 }
  0x4b   :  { %393 = vmatprep.subr.bf16.mxu0 %v598_v0  ;;  %413 = vmatprep.subr.bf16.mxu1 %v598_v0 }
  0x4e   :  { %394 = vmatpush3.bf16.msra.mxu0 %v438_v9  ;;  %414 = vmatpush3.bf16.msra.mxu1 %v446_v14 }
  0x4f   :  { %395 = vmatprep.subr.bf16.mxu0 %v598_v0  ;;  %415 = vmatprep.subr.bf16.mxu1 %v598_v0 }
  0x52   :  { %396 = vmatpush3.bf16.msra.mxu0 %v439_v11  ;;  %416 = vmatpush3.bf16.msra.mxu1 %v447_v16 }
  0x53   :  { %397 = vmatprep.subr.bf16.mxu0 %v598_v0  ;;  %417 = vmatprep.subr.bf16.mxu1 %v598_v0 }
  0x56   :  { %398 = vmatpush3.bf16.msra.mxu0 %v440_v13  ;;  %418 = vmatpush3.bf16.msra.mxu1 %v448_v17 }
  0x59   :  { %400 = vmatmul.mubr.bf16.vlgmr.msra.gmra.mrb[0].mxu0 %v65_v15 }
 0x12c   :  { %v171_v19 = vpop.f32.mrb[0].mxu0 }
 0x12d   :  { %v172_v20 = vadd.f32 %v347_v18, %v171_v19  ;;  %v401_v21 = vpop.f32.mrb[1].mxu0 }
 0x12e   :  { %v174_v22 = vpop.f32.mrb[2].mxu0 }
 0x12f   :  { %vm177_vm1 = vcmp.ge.f32.partialorder %v172_v20, 0.0  ;;  %v178_v23 = vmul.f32 0.2, %v172_v20  ;;  %v402_v24 = vpop.f32.mrb[3].mxu0 }
 0x131   :  { %v179_v25 = vsel %vm177_vm1, %v172_v20, %v178_v23 }
 0x132   :  { %v181_v26 = vpack.c.bf16 %v179_v25, %v179_v25  ;;  %180 = vst [vmem:[#allocation8] sm:$0xff] %v179_v25 }
 0x134   :  { %420 = vmatmul.mubr.bf16.vlgmr.msra.gmra.mrb[0].mxu1 %v181_v26 }
 0x207   :  { %v287_v28 = vpop.f32.mrb[0].mxu1 }
 0x208   :  { %v288_v29 = vadd.f32 %v356_v27, %v287_v28  ;;  %v421_v30 = vpop.f32.mrb[1].mxu1 }
 0x209   :  { %v290_v31 = vpop.f32.mrb[2].mxu1 }
 0x20a   :  { %293 = vst [vmem:[#allocation9] sm:$0xff] %v288_v29  ;;  %294 = vmax.xlane.f32.xlu0 %v288_v29  ;;  %v422_v32 = vpop.f32.mrb[3].mxu1 }
 0x297   :  { %v295_v33 = vpop.xlane.xlu0 %294 }
 0x298   :  { %v296_v34 = vsub.f32 %v288_v29, %v295_v33 }
 0x29a   :  { %v297_v35 = vmul.f32 1.442695, %v296_v34 }
 0x29c   :  { %449 = vpow2.f32 %v297_v35 }
 0x2a6   :  { %v450_v36 = vpop.eup %449 }
 0x2a7   :  { %299 = vadd.xlane.f32.xlu0 %v450_v36 }
 0x2a8   :  { %530 = shalt.err (!%p527_p0)
}
 0x2a9   :  { %s531_s22 = scalar_lea.hbm %s733_s6, 128 }
 0x2aa   :  { %p532_p1 = scmp.ne.s32.totalorder %s733_s6, %s531_s22  ;;  %p535_p2 = scmp.lt.u32.totalorder %s531_s22, %s733_s6 }
 0x2ac   :  { %p537_p3 = pnand %p535_p2, %p532_p1 }
 0x2ae   :  { %540 = shalt.err (!%p537_p3)
}
 0x2af   :  { %323 = dma.vmem_to_hbm [thread:$0]  %s321_s17, 128, %s733_s6, [#allocation10]  }
 0x2b0   :  { %s541_s28 = scalar_lea.vmem %s311_s19, 128  ;;  %p546_p5 = scmp.lt.s32.totalorder %s311_s19, %s311_s19 }
 0x2b1   :  { %p542_p4 = scmp.ne.s32.totalorder %s311_s19, %s541_s28  ;;  %p547_p6 = scmp.lt.s32.totalorder %s541_s28, %s541_s28 }
 0x2b3   :  { %p548_p7 = por %p547_p6, %p546_p5 }
 0x2b5   :  { %p549_p8 = pnand %p548_p7, %p542_p4 }
 0x2b7   :  { %552 = shalt.err (!%p549_p8)
}
 0x2b8   :  { %s553_s8 = scalar_lea.hbm %s732_s5, 128 }
 0x2b9   :  { %p554_p9 = scmp.ne.s32.totalorder %s732_s5, %s553_s8  ;;  %p557_p10 = scmp.lt.u32.totalorder %s553_s8, %s732_s5 }
 0x2bb   :  { %p559_p11 = pnand %p557_p10, %p554_p9 }
 0x2bd   :  { %562 = shalt.err (!%p559_p11)
}
 0x2be   :  { %313 = dma.vmem_to_hbm [thread:$0]  %s311_s19, 128, %s732_s5, [#allocation4]  }
 0x2bf   :  { %s602_s15 = smov [#allocation11]  }
 0x2c0   :  { %s330_s3 = sshll.u32 %s602_s15, 4  ;;  %s331_s3 = int_to_ptr.vmem [resolvable:$true] %s330_s3 }
 0x2c1   :  { %s563_s11 = scalar_lea.vmem %s331_s3, 128  ;;  %p568_p13 = scmp.lt.s32.totalorder %s331_s3, %s331_s3 }
 0x2c2   :  { %p564_p12 = scmp.ne.s32.totalorder %s331_s3, %s563_s11  ;;  %p569_p0 = scmp.lt.s32.totalorder %s563_s11, %s563_s11 }
 0x2c4   :  { %p570_p1 = por %p569_p0, %p568_p13 }
 0x2c6   :  { %p571_p2 = pnand %p570_p1, %p564_p12 }
 0x334   :  { %v300_v37 = vpop.xlane.xlu0 %299 }
 0x335   :  { %451 = vrcp.f32 %v300_v37 }
 0x33f   :  { %v452_v38 = vpop.eup %451 }
 0x340   :  { %v302_v39 = vmul.f32 %v452_v38, %v450_v36 }
 0x342   :  { %303 = vst [vmem:[#allocation11] sm:$0xff] %v302_v39 }
 0x343   :  { %574 = shalt.err (!%p571_p2)
}
 0x344   :  { %s575_s2 = scalar_lea.hbm %s734_s7, 128 }
 0x345   :  { %p576_p3 = scmp.ne.s32.totalorder %s734_s7, %s575_s2  ;;  %p579_p4 = scmp.lt.u32.totalorder %s575_s2, %s734_s7 }
 0x347   :  { %p581_p5 = pnand %p579_p4, %p576_p3 }
 0x349   :  { %584 = shalt.err (!%p581_p5)
}
 0x34a   :  { %333 = dma.vmem_to_hbm [thread:$0]  %s331_s3, 128, %s734_s7, [#allocation10]  }
 0x34b   :  { %589 = dma.done.wait [#allocation4], 128  }
 0x34c   :  { %590 = vsyncadd [#allocation4], 4294967168 }
 0x34d   :  { %591 = dma.done.wait [#allocation10], 256  }
 0x34e   :  { %592 = vsyncadd [#allocation10], 4294967040 }
 0x34f   :  { %343 = vsyncpa [#allocation3], 1 }
 0x350   :  { %344 = vsyncpa [#allocation6], 1 }
 0x351   :  { %345 = vsyncpa [#allocation4], 1 }
 0x352   :  { %346 = vsyncpa [#allocation10], 1 }

</bundles_post_ra>
